<compile_context>
chip_gen: v6e
topology: v6e:2x2x1
jax: 0.10.0
libtpu: 0.0.40
codegen_flags: <defaults>
</compile_context>

<pallas_src>
import functools

import jax
import jax.numpy as jnp
from jax.experimental import pallas as pl
from jax.experimental.pallas import tpu as pltpu

LANE = 128          # lane-padded width of the packed output head
H_FUSED = 768       # 512 (transform layer-1) + 256 (blend layer-1)
H_TRANSFORM = 512
H2 = 256


def _alignment_kernel(
    face_ref, glasses_ref,                 # [bm, F] f32 each (cast to bf16 in-kernel)
    wf_face_ref, wf_gl_ref, b_first_ref,   # [F, 768] bf16 x2, [1, 768] f32
    w2_ref, b2_ref,                        # [512, 256] bf16, [1, 256] f32
    w3p_ref, w5p_ref, b_out_ref,           # [256, 128] bf16 x2, [1, 128] f32
    out_ref,                               # [bm, 128] f32
):
    # In-kernel bf16 cast (VPU, hidden under the MXU-bound loop) replaces the
    # old wrapper-side astype+pad pass: inputs now cost 4 B/elem of HBM reads.
    face = face_ref[...].astype(jnp.bfloat16)
    glasses = glasses_ref[...].astype(jnp.bfloat16)

    # Fused first layer of both branches; the input concat is expressed as two
    # dots over the un-concatenated halves (K split of the fused weight).
    h = jnp.dot(face, wf_face_ref[...], preferred_element_type=jnp.float32)
    h += jnp.dot(glasses, wf_gl_ref[...], preferred_element_type=jnp.float32)
    h = jnp.maximum(h + b_first_ref[...], 0.0)                 # [bm, 768] f32

    h1 = h[:, :H_TRANSFORM]                                    # transform branch [bm, 512]
    g1 = h[:, H_TRANSFORM:]                                    # blend branch     [bm, 256]

    # transform_net second layer: Linear(512, 256) + ReLU
    h2 = jnp.dot(h1.astype(jnp.bfloat16), w2_ref[...],
                 preferred_element_type=jnp.float32)
    h2 = jnp.maximum(h2 + b2_ref[...], 0.0)                    # [bm, 256]

    # Packed heads: lanes 0..5 <- h2 @ w3 (+b3), lane 6 <- g1 @ w5 (+b5)
    y = jnp.dot(h2.astype(jnp.bfloat16), w3p_ref[...],
                preferred_element_type=jnp.float32)
    y += jnp.dot(g1.astype(jnp.bfloat16), w5p_ref[...],
                 preferred_element_type=jnp.float32)
    y = y + b_out_ref[...]

    # Sigmoid only on the blend-logit lane (lane 6); transform lanes stay linear.
    # Kept in-kernel on purpose: EUP/VPU work on [bm,128] is free filler here.
    lane = jax.lax.broadcasted_iota(jnp.int32, y.shape, 1)
    y = jnp.where(lane == 6, jax.nn.sigmoid(y), y)
    out_ref[...] = y.astype(out_ref.dtype)


def init_params(key, feature_dim):
    """Deterministic synthetic parameters (shapes match the PyTorch module)."""
    in_dim = 2 * feature_dim
    ks = jax.random.split(key, 10)

    def lin(kw, kb, fan_in, fan_out):
        bound = 1.0 / jnp.sqrt(jnp.float32(fan_in))
        w = jax.random.uniform(kw, (fan_in, fan_out), jnp.float32, -bound, bound)
        b = jax.random.uniform(kb, (1, fan_out), jnp.float32, -bound, bound)
        return w, b

    w1, b1 = lin(ks[0], ks[1], in_dim, 512)   # transform_net Linear(2F, 512)
    w2, b2 = lin(ks[2], ks[3], 512, 256)      # transform_net Linear(512, 256)
    w3, b3 = lin(ks[4], ks[5], 256, 6)        # transform_net Linear(256, 6)
    w4, b4 = lin(ks[6], ks[7], in_dim, 256)   # blend_net     Linear(2F, 256)
    w5, b5 = lin(ks[8], ks[9], 256, 1)        # blend_net     Linear(256, 1)
    return dict(w1=w1, b1=b1, w2=w2, b2=b2, w3=w3, b3=b3,
                w4=w4, b4=b4, w5=w5, b5=b5)


def prepare_params(params):
    """One-time weight preparation (outside the per-call jitted path):
    fuse the two first-layer weights, lane-pad the tiny output heads into a
    single packed head, and cast weights to bf16 (f32 accumulation in-kernel)."""
    two_f = params["w1"].shape[0]
    F = two_f // 2

    # Fused first layer [2F, 768] = [w1 | w4], split along K for the two inputs.
    w_first = jnp.concatenate([params["w1"], params["w4"]], axis=1)     # [2F, 768]
    b_first = jnp.concatenate([params["b1"], params["b4"]], axis=1)     # [1, 768]

    # Packed output head: lanes 0..5 = transform (w3/b3), lane 6 = blend (w5/b5).
    w3p = jnp.zeros((H2, LANE), jnp.float32).at[:, :6].set(params["w3"])
    w5p = jnp.zeros((H2, LANE), jnp.float32).at[:, 6:7].set(params["w5"])
    b_out = (jnp.zeros((1, LANE), jnp.float32)
             .at[:, :6].set(params["b3"])
             .at[:, 6:7].set(params["b5"]))

    bf16 = jnp.bfloat16
    return dict(
        wf_face=w_first[:F].astype(bf16),       # [F, 768]
        wf_glasses=w_first[F:].astype(bf16),    # [F, 768]
        b_first=b_first,                        # [1, 768] f32
        w2=params["w2"].astype(bf16),           # [512, 256]
        b2=params["b2"],                        # [1, 256] f32
        w3p=w3p.astype(bf16),                   # [256, 128]
        w5p=w5p.astype(bf16),                   # [256, 128]
        b_out=b_out,                            # [1, 128] f32
    )


def _pick_block_m(batch_size: int) -> int:
    """MXU-friendly batch tiles.  Each tier requires >= 4 grid steps so that
    v7x's 2 TensorCores each get >= 2 pipelined steps (DMA hidden behind
    compute on both cores); the 1024 tier amortizes the ~0.35us per-step
    overhead for large batches on v6e/v7x."""
    for bm in (1024, 512, 256, 128):
        if batch_size >= 4 * bm:
            return bm
    if batch_size > 128:
        return 128
    # Tiny batches: a single tile.  Inputs arrive f32 (8-row sublanes), so
    # 8-row granularity is the natural rounding here.
    return max(8, ((batch_size + 7) // 8) * 8)


def _const_spec(shape):
    """Full-block spec for weights/biases (same block every grid step).
    Single-buffer them: the block never changes, so default double-buffering
    would only waste VMEM (matters most on v7x's smaller VMEM)."""
    index_map = lambda i: (0,) * len(shape)
    try:
        return pl.BlockSpec(shape, index_map, pipeline_mode=pl.Buffered(1))
    except (TypeError, AttributeError):
        # Older jax: falls back to default double-buffering (~2.6 MiB extra
        # VMEM for the constant weights; still well within the 32 MiB cap).
        return pl.BlockSpec(shape, index_map)


@functools.partial(jax.jit, static_argnames=("block_m",))
def _forward_impl(face_features, glasses_features, p, block_m):
    B, F = face_features.shape
    bm = block_m
    n_blocks = pl.cdiv(B, bm)
    Bp = n_blocks * bm  # output over-allocated to whole blocks (lane/sublane-dense
                        # stores); rows >= B are garbage and sliced off below.

    out = pl.pallas_call(
        _alignment_kernel,
        out_shape=jax.ShapeDtypeStruct((Bp, LANE), jnp.float32),
        grid_spec=pltpu.PrefetchScalarGridSpec(
            num_scalar_prefetch=0,
            grid=(n_blocks,),
            in_specs=[
                pl.BlockSpec((bm, F), lambda i: (i, 0)),   # face (f32, cast in-kernel)
                pl.BlockSpec((bm, F), lambda i: (i, 0)),   # glasses
                _const_spec((F, H_FUSED)),                 # fused layer-1 (face half)
                _const_spec((F, H_FUSED)),                 # fused layer-1 (glasses half)
                _const_spec((1, H_FUSED)),                 # fused layer-1 bias
                _const_spec((H_TRANSFORM, H2)),            # w2
                _const_spec((1, H2)),                      # b2
                _const_spec((H2, LANE)),                   # w3 (lane-padded)
                _const_spec((H2, LANE)),                   # w5 (lane-padded)
                _const_spec((1, LANE)),                    # packed head bias
            ],
            out_specs=pl.BlockSpec((bm, LANE), lambda i: (i, 0)),
        ),
        compiler_params=pltpu.CompilerParams(
            dimension_semantics=("parallel",),
            # 32 MiB: fixes v5e's 16 MiB scoped default, covers the ~16 MiB
            # bm=1024 working set, and leaves headroom on v7x (64 MiB physical).
            vmem_limit_bytes=32 * 1024 * 1024,
        ),
    )(face_features, glasses_features,
      p["wf_face"], p["wf_glasses"], p["b_first"],
      p["w2"], p["b2"],
      p["w3p"], p["w5p"], p["b_out"])

    return {
        "transform_params": out[:B, :6],   # [B, 6]
        "blend_weight": out[:B, 6:7],      # [B, 1] (sigmoid applied in-kernel)
    }


def glasses_alignment_forward(face_features, glasses_features, prepared_params):
    block_m = _pick_block_m(face_features.shape[0])
    return _forward_impl(face_features, glasses_features, prepared_params, block_m)


def reference_forward(face_features, glasses_features, params):
    """Pure f32 reference with the original module semantics."""
    x = jnp.concatenate([face_features, glasses_features], axis=-1)
    h = jnp.maximum(x @ params["w1"] + params["b1"], 0.0)
    h = jnp.maximum(h @ params["w2"] + params["b2"], 0.0)
    t = h @ params["w3"] + params["b3"]
    g = jnp.maximum(x @ params["w4"] + params["b4"], 0.0)
    b = jax.nn.sigmoid(g @ params["w5"] + params["b5"])
    return {"transform_params": t, "blend_weight": b}


if __name__ == "__main__":
    B = 8
    FEATURE_DIM = 128  # small stand-in for the default 768

    key = jax.random.PRNGKey(0)
    k_face, k_glasses, k_params = jax.random.split(key, 3)
    face = jax.random.normal(k_face, (B, FEATURE_DIM), jnp.float32)
    glasses = jax.random.normal(k_glasses, (B, FEATURE_DIM), jnp.float32)
    params = init_params(k_params, FEATURE_DIM)
    prepared = prepare_params(params)   # one-time prep, off the per-call path

    out = glasses_alignment_forward(face, glasses, prepared)
    jax.block_until_ready(out)

    ref = reference_forward(face, glasses, params)
    assert out["transform_params"].shape == (B, 6)
    assert out["blend_weight"].shape == (B, 1)
    # Tolerance relaxed vs. the f32 reference: the kernel feeds the MXU with
    # bf16 operands (f32 accumulation), as recommended for throughput.
    assert jnp.allclose(out["transform_params"], ref["transform_params"],
                        atol=5e-2, rtol=5e-2)
    assert jnp.allclose(out["blend_weight"], ref["blend_weight"],
                        atol=5e-2, rtol=5e-2)

    print("KERNEL_OK")
</pallas_src>

<mosaic_0001>
module attributes {stable_mosaic.version = 11 : i64} {
  func.func @_alignment_kernel(%arg0: i32, %arg1: memref<8x128xf32, #tpu.memory_space<vmem>>, %arg2: memref<8x128xf32, #tpu.memory_space<vmem>>, %arg3: memref<128x768xbf16, #tpu.memory_space<vmem>>, %arg4: memref<128x768xbf16, #tpu.memory_space<vmem>>, %arg5: memref<1x768xf32, #tpu.memory_space<vmem>>, %arg6: memref<512x256xbf16, #tpu.memory_space<vmem>>, %arg7: memref<1x256xf32, #tpu.memory_space<vmem>>, %arg8: memref<256x128xbf16, #tpu.memory_space<vmem>>, %arg9: memref<256x128xbf16, #tpu.memory_space<vmem>>, %arg10: memref<1x128xf32, #tpu.memory_space<vmem>>, %arg11: memref<8x128xf32, #tpu.memory_space<vmem>>) attributes {dimension_semantics = [#tpu.dimension_semantics<parallel>], iteration_bounds = array<i64: 1>, scalar_prefetch = 0 : i64, scratch_operands = 0 : i64, tpu.core_type = #tpu.core_type<tc>, window_params = [{transform_indices = @transform_0, window_bounds = array<i64: 8, 128>}, {transform_indices = @transform_1, window_bounds = array<i64: 8, 128>}, {pipeline_mode = #tpu.pipeline_mode<synchronous>, transform_indices = @transform_2, window_bounds = array<i64: 128, 768>}, {pipeline_mode = #tpu.pipeline_mode<synchronous>, transform_indices = @transform_3, window_bounds = array<i64: 128, 768>}, {pipeline_mode = #tpu.pipeline_mode<synchronous>, transform_indices = @transform_4, window_bounds = array<i64: 1, 768>}, {pipeline_mode = #tpu.pipeline_mode<synchronous>, transform_indices = @transform_5, window_bounds = array<i64: 512, 256>}, {pipeline_mode = #tpu.pipeline_mode<synchronous>, transform_indices = @transform_6, window_bounds = array<i64: 1, 256>}, {pipeline_mode = #tpu.pipeline_mode<synchronous>, transform_indices = @transform_7, window_bounds = array<i64: 256, 128>}, {pipeline_mode = #tpu.pipeline_mode<synchronous>, transform_indices = @transform_8, window_bounds = array<i64: 256, 128>}, {pipeline_mode = #tpu.pipeline_mode<synchronous>, transform_indices = @transform_9, window_bounds = array<i64: 1, 128>}, {transform_indices = @transform_10, window_bounds = array<i64: 8, 128>}]} {
    %c0 = arith.constant 0 : index
    %c0_0 = arith.constant 0 : index
    %0 = vector.load %arg1[%c0, %c0_0] : memref<8x128xf32, #tpu.memory_space<vmem>>, vector<8x128xf32>
    %1 = arith.truncf %0 : vector<8x128xf32> to vector<8x128xbf16>
    %c0_1 = arith.constant 0 : index
    %c0_2 = arith.constant 0 : index
    %2 = vector.load %arg2[%c0_1, %c0_2] : memref<8x128xf32, #tpu.memory_space<vmem>>, vector<8x128xf32>
    %3 = arith.truncf %2 : vector<8x128xf32> to vector<8x128xbf16>
    %c0_3 = arith.constant 0 : index
    %c0_4 = arith.constant 0 : index
    %4 = vector.load %arg3[%c0_3, %c0_4] : memref<128x768xbf16, #tpu.memory_space<vmem>>, vector<128x768xbf16>
    %cst = arith.constant dense<0.000000e+00> : vector<8x768xf32>
    %5 = tpu.matmul %1, %4, %cst {dimension_numbers = #tpu.dot_dimension_numbers<[1], [0], [0], [1], [0, 0, 1, 1], [], []>} : vector<8x128xbf16>, vector<128x768xbf16>, vector<8x768xf32> -> vector<8x768xf32>
    %c0_5 = arith.constant 0 : index
    %c0_6 = arith.constant 0 : index
    %6 = vector.load %arg4[%c0_5, %c0_6] : memref<128x768xbf16, #tpu.memory_space<vmem>>, vector<128x768xbf16>
    %cst_7 = arith.constant dense<0.000000e+00> : vector<8x768xf32>
    %7 = tpu.matmul %3, %6, %cst_7 {dimension_numbers = #tpu.dot_dimension_numbers<[1], [0], [0], [1], [0, 0, 1, 1], [], []>} : vector<8x128xbf16>, vector<128x768xbf16>, vector<8x768xf32> -> vector<8x768xf32>
    %8 = arith.addf %5, %7 : vector<8x768xf32>
    %c0_8 = arith.constant 0 : index
    %c0_9 = arith.constant 0 : index
    %9 = vector.load %arg5[%c0_8, %c0_9] : memref<1x768xf32, #tpu.memory_space<vmem>>, vector<1x768xf32>
    %10 = vector.broadcast %9 : vector<1x768xf32> to vector<8x768xf32>
    %11 = arith.addf %8, %10 : vector<8x768xf32>
    %cst_10 = arith.constant 0.000000e+00 : f32
    %12 = vector.broadcast %cst_10 : f32 to vector<8x768xf32>
    %13 = arith.maximumf %11, %12 : vector<8x768xf32>
    %14 = vector.extract_strided_slice %13 {offsets = [0, 0], sizes = [8, 512], strides = [1, 1]} : vector<8x768xf32> to vector<8x512xf32>
    %15 = vector.extract_strided_slice %13 {offsets = [0, 512], sizes = [8, 256], strides = [1, 1]} : vector<8x768xf32> to vector<8x256xf32>
    %16 = arith.truncf %14 : vector<8x512xf32> to vector<8x512xbf16>
    %c0_11 = arith.constant 0 : index
    %c0_12 = arith.constant 0 : index
    %17 = vector.load %arg6[%c0_11, %c0_12] : memref<512x256xbf16, #tpu.memory_space<vmem>>, vector<512x256xbf16>
    %cst_13 = arith.constant dense<0.000000e+00> : vector<8x256xf32>
    %18 = tpu.matmul %16, %17, %cst_13 {dimension_numbers = #tpu.dot_dimension_numbers<[1], [0], [0], [1], [0, 0, 1, 1], [], []>} : vector<8x512xbf16>, vector<512x256xbf16>, vector<8x256xf32> -> vector<8x256xf32>
    %c0_14 = arith.constant 0 : index
    %c0_15 = arith.constant 0 : index
    %19 = vector.load %arg7[%c0_14, %c0_15] : memref<1x256xf32, #tpu.memory_space<vmem>>, vector<1x256xf32>
    %20 = vector.broadcast %19 : vector<1x256xf32> to vector<8x256xf32>
    %21 = arith.addf %18, %20 : vector<8x256xf32>
    %cst_16 = arith.constant 0.000000e+00 : f32
    %22 = vector.broadcast %cst_16 : f32 to vector<8x256xf32>
    %23 = arith.maximumf %21, %22 : vector<8x256xf32>
    %24 = arith.truncf %23 : vector<8x256xf32> to vector<8x256xbf16>
    %c0_17 = arith.constant 0 : index
    %c0_18 = arith.constant 0 : index
    %25 = vector.load %arg8[%c0_17, %c0_18] : memref<256x128xbf16, #tpu.memory_space<vmem>>, vector<256x128xbf16>
    %cst_19 = arith.constant dense<0.000000e+00> : vector<8x128xf32>
    %26 = tpu.matmul %24, %25, %cst_19 {dimension_numbers = #tpu.dot_dimension_numbers<[1], [0], [0], [1], [0, 0, 1, 1], [], []>} : vector<8x256xbf16>, vector<256x128xbf16>, vector<8x128xf32> -> vector<8x128xf32>
    %27 = arith.truncf %15 : vector<8x256xf32> to vector<8x256xbf16>
    %c0_20 = arith.constant 0 : index
    %c0_21 = arith.constant 0 : index
    %28 = vector.load %arg9[%c0_20, %c0_21] : memref<256x128xbf16, #tpu.memory_space<vmem>>, vector<256x128xbf16>
    %cst_22 = arith.constant dense<0.000000e+00> : vector<8x128xf32>
    %29 = tpu.matmul %27, %28, %cst_22 {dimension_numbers = #tpu.dot_dimension_numbers<[1], [0], [0], [1], [0, 0, 1, 1], [], []>} : vector<8x256xbf16>, vector<256x128xbf16>, vector<8x128xf32> -> vector<8x128xf32>
    %30 = arith.addf %26, %29 : vector<8x128xf32>
    %c0_23 = arith.constant 0 : index
    %c0_24 = arith.constant 0 : index
    %31 = vector.load %arg10[%c0_23, %c0_24] : memref<1x128xf32, #tpu.memory_space<vmem>>, vector<1x128xf32>
    %32 = vector.broadcast %31 : vector<1x128xf32> to vector<8x128xf32>
    %33 = arith.addf %30, %32 : vector<8x128xf32>
    %34 = tpu.iota {dimensions = array<i32: 1>} : vector<8x128xi32>
    %c6_i32 = arith.constant 6 : i32
    %35 = vector.broadcast %c6_i32 : i32 to vector<8x128xi32>
    %36 = arith.cmpi eq, %34, %35 : vector<8x128xi32>
    %37 = arith.negf %33 : vector<8x128xf32>
    %38 = math.exp %37 : vector<8x128xf32>
    %cst_25 = arith.constant 1.000000e+00 : f32
    %39 = vector.broadcast %cst_25 : f32 to vector<8x128xf32>
    %40 = arith.addf %39, %38 : vector<8x128xf32>
    %41 = arith.divf %39, %40 : vector<8x128xf32>
    %42 = arith.select %36, %41, %33 : vector<8x128xi1>, vector<8x128xf32>
    %c0_26 = arith.constant 0 : index
    %c0_27 = arith.constant 0 : index
    %43 = vector.load %arg11[%c0_26, %c0_27] : memref<8x128xf32, #tpu.memory_space<vmem>>, vector<8x128xf32>
    tpu.vector_store %arg11[%c0_26, %c0_27], %42 {strides = array<i32>} : memref<8x128xf32, #tpu.memory_space<vmem>>, vector<8x128xf32>,
    return
  }
  func.func @transform_0(%arg0: i32) -> (i32, i32) {
    %c0_i32 = arith.constant 0 : i32
    %c0_i32_0 = arith.constant 0 : i32
    return %arg0, %c0_i32 : i32, i32
  }
  func.func @transform_1(%arg0: i32) -> (i32, i32) {
    %c0_i32 = arith.constant 0 : i32
    %c0_i32_0 = arith.constant 0 : i32
    return %arg0, %c0_i32 : i32, i32
  }
  func.func @transform_2(%arg0: i32) -> (i32, i32) {
    %c0_i32 = arith.constant 0 : i32
    %c0_i32_0 = arith.constant 0 : i32
    %c0_i32_1 = arith.constant 0 : i32
    return %c0_i32, %c0_i32_0 : i32, i32
  }
  func.func @transform_3(%arg0: i32) -> (i32, i32) {
    %c0_i32 = arith.constant 0 : i32
    %c0_i32_0 = arith.constant 0 : i32
    %c0_i32_1 = arith.constant 0 : i32
    return %c0_i32, %c0_i32_0 : i32, i32
  }
  func.func @transform_4(%arg0: i32) -> (i32, i32) {
    %c0_i32 = arith.constant 0 : i32
    %c0_i32_0 = arith.constant 0 : i32
    %c0_i32_1 = arith.constant 0 : i32
    return %c0_i32, %c0_i32_0 : i32, i32
  }
  func.func @transform_5(%arg0: i32) -> (i32, i32) {
    %c0_i32 = arith.constant 0 : i32
    %c0_i32_0 = arith.constant 0 : i32
    %c0_i32_1 = arith.constant 0 : i32
    return %c0_i32, %c0_i32_0 : i32, i32
  }
  func.func @transform_6(%arg0: i32) -> (i32, i32) {
    %c0_i32 = arith.constant 0 : i32
    %c0_i32_0 = arith.constant 0 : i32
    %c0_i32_1 = arith.constant 0 : i32
    return %c0_i32, %c0_i32_0 : i32, i32
  }
  func.func @transform_7(%arg0: i32) -> (i32, i32) {
    %c0_i32 = arith.constant 0 : i32
    %c0_i32_0 = arith.constant 0 : i32
    %c0_i32_1 = arith.constant 0 : i32
    return %c0_i32, %c0_i32_0 : i32, i32
  }
  func.func @transform_8(%arg0: i32) -> (i32, i32) {
    %c0_i32 = arith.constant 0 : i32
    %c0_i32_0 = arith.constant 0 : i32
    %c0_i32_1 = arith.constant 0 : i32
    return %c0_i32, %c0_i32_0 : i32, i32
  }
  func.func @transform_9(%arg0: i32) -> (i32, i32) {
    %c0_i32 = arith.constant 0 : i32
    %c0_i32_0 = arith.constant 0 : i32
    %c0_i32_1 = arith.constant 0 : i32
    return %c0_i32, %c0_i32_0 : i32, i32
  }
  func.func @transform_10(%arg0: i32) -> (i32, i32) {
    %c0_i32 = arith.constant 0 : i32
    %c0_i32_0 = arith.constant 0 : i32
    return %arg0, %c0_i32 : i32, i32
  }
}

</mosaic_0001>

<bundles_post_ra>
// kernel: _forward_impl.1
= control target key start
LH: loop header
LB: loop body
LE: loop exit
PB: predicated region body
PF: predicated region fallthrough
CT: control target
= control target key end

     0   :  { %15 = vsyncpa [#allocation3], 0  ;;  %s2706_s0 = inlined_call_operand.hbm [shape: f32[8,128], index: 0, kind: input, shape index: {}]   ;;  %s2707_s1 = inlined_call_operand.hbm [shape: f32[8,128], index: 1, kind: input, shape index: {}]   ;;  %s2708_s2 = inlined_call_operand.hbm [shape: bf16[128,768], index: 2, kind: input, shape index: {}]   ;;  %s2709_s3 = inlined_call_operand.hbm [shape: bf16[128,768], index: 3, kind: input, shape index: {}]   ;;  %s2710_s4 = inlined_call_operand.hbm [shape: f32[1,768], index: 4, kind: input, shape index: {}]   ;;  %s2711_s5 = inlined_call_operand.hbm [shape: bf16[512,256], index: 5, kind: input, shape index: {}]   ;;  %s2712_s6 = inlined_call_operand.vmem [shape: f32[1,256], index: 6, kind: input, shape index: {}]   ;;  %s2713_s7 = inlined_call_operand.hbm [shape: bf16[256,128], index: 7, kind: input, shape index: {}]   ;;  %s2714_s8 = inlined_call_operand.hbm [shape: bf16[256,128], index: 8, kind: input, shape index: {}]   ;;  %s2715_s9 = inlined_call_operand.vmem [shape: f32[1,128], index: 9, kind: input, shape index: {}]   ;;  %s2716_s10 = inlined_call_operand.vmem [shape: f32[8,128], index: 10, kind: output, shape index: {}]  }
   0x1   :  { %16 = vsyncpa [#allocation5], 0 }
   0x2   :  { %17 = vsyncpa [#allocation8], 0 }
   0x3   :  { %18 = vsyncpa [#allocation11], 0 }
   0x4   :  { %19 = vsyncpa [#allocation14], 0  ;;  %s2560_s13 = smov [#allocation4]  }
   0x5   :  { %s36_s14 = sshll.u32 %s2560_s13, 4  ;;  %s37_s14 = int_to_ptr.vmem [resolvable:$true] %s36_s14 }
   0x6   :  { %s2398_s15 = scalar_lea.vmem %s37_s14, 128  ;;  %p2403_p1 = scmp.lt.s32.totalorder %s37_s14, %s37_s14 }
   0x7   :  { %p2399_p0 = scmp.ne.s32.totalorder %s37_s14, %s2398_s15  ;;  %p2404_p2 = scmp.lt.s32.totalorder %s2398_s15, %s2398_s15 }
   0x9   :  { %p2405_p3 = por %p2404_p2, %p2403_p1 }
   0xb   :  { %p2406_p4 = pnand %p2405_p3, %p2399_p0 }
   0xd   :  { %2409 = shalt.err (!%p2406_p4)
}
   0xe   :  { %39 = dma.hbm_to_vmem [thread:$0]  %s2707_s1, 128, %s37_s14, [#allocation5]  }
   0xf   :  { %s2561_s18 = smov [#allocation7]   ;;  %s2562_s20 = smov [#allocation10]  }
  0x10   :  { %s57_s19 = sshll.u32 %s2561_s18, 4  ;;  %s79_s21 = sshll.u32 %s2562_s20, 4  ;;  %s58_s19 = int_to_ptr.vmem [resolvable:$true] %s57_s19  ;;  %s80_s21 = int_to_ptr.vmem [resolvable:$true] %s79_s21 }
  0x11   :  { %s2418_s22 = scalar_lea.vmem %s58_s19, 6144  ;;  %p2423_p6 = scmp.lt.s32.totalorder %s58_s19, %s58_s19 }
  0x12   :  { %p2419_p5 = scmp.ne.s32.totalorder %s58_s19, %s2418_s22  ;;  %p2424_p7 = scmp.lt.s32.totalorder %s2418_s22, %s2418_s22 }
  0x14   :  { %p2425_p8 = por %p2424_p7, %p2423_p6 }
  0x16   :  { %p2426_p9 = pnand %p2425_p8, %p2419_p5 }
  0x18   :  { %2429 = shalt.err (!%p2426_p9)
}
  0x19   :  { %s2563_s23 = smov 384   ;;  %s2564_s24 = smov 24  }
  0x1a   :  { %63 = dma.hbm_to_vmem [thread:$0]  %s2709_s3, 6144, %s58_s19, [#allocation8], %s2563_s23, %s2563_s23, %s2564_s24  }
  0x1b   :  { %s2438_s1 = scalar_lea.vmem %s80_s21, 8192  ;;  %p2443_p11 = scmp.lt.s32.totalorder %s80_s21, %s80_s21 }
  0x1c   :  { %p2439_p10 = scmp.ne.s32.totalorder %s80_s21, %s2438_s1  ;;  %p2444_p12 = scmp.lt.s32.totalorder %s2438_s1, %s2438_s1 }
  0x1e   :  { %p2445_p13 = por %p2444_p12, %p2443_p11 }
  0x20   :  { %p2446_p0 = pnand %p2445_p13, %p2439_p10 }
  0x22   :  { %2449 = shalt.err (!%p2446_p0)
}
  0x23   :  { %s2565_s27 = smov 128   ;;  %s2566_s28 = smov 8  }
  0x24   :  { %85 = dma.hbm_to_vmem [thread:$0]  %s2711_s5, 8192, %s80_s21, [#allocation11], %s2565_s27, %s2565_s27, %s2566_s28  }
  0x25   :  { %s2567_s11 = smov [#allocation2]   ;;  %s2568_s13 = smov [#allocation6]  }
  0x26   :  { %s26_s12 = sshll.u32 %s2567_s11, 4  ;;  %s45_s14 = sshll.u32 %s2568_s13, 4  ;;  %s27_s12 = int_to_ptr.vmem [resolvable:$true] %s26_s12  ;;  %s46_s14 = int_to_ptr.vmem [resolvable:$true] %s45_s14 }
  0x27   :  { %s2458_s3 = scalar_lea.vmem %s27_s12, 128  ;;  %p2463_p2 = scmp.lt.s32.totalorder %s27_s12, %s27_s12 }
  0x28   :  { %p2459_p1 = scmp.ne.s32.totalorder %s27_s12, %s2458_s3  ;;  %p2464_p3 = scmp.lt.s32.totalorder %s2458_s3, %s2458_s3 }
  0x2a   :  { %p2465_p4 = por %p2464_p3, %p2463_p2 }
  0x2c   :  { %p2466_p5 = pnand %p2465_p4, %p2459_p1 }
  0x2e   :  { %2469 = shalt.err (!%p2466_p5)
}
  0x2f   :  { %29 = dma.hbm_to_vmem [thread:$0]  %s2706_s0, 128, %s27_s12, [#allocation3]  }
  0x30   :  { %s2478_s17 = scalar_lea.vmem %s46_s14, 6144  ;;  %p2483_p7 = scmp.lt.s32.totalorder %s46_s14, %s46_s14 }
  0x31   :  { %p2479_p6 = scmp.ne.s32.totalorder %s46_s14, %s2478_s17  ;;  %p2484_p8 = scmp.lt.s32.totalorder %s2478_s17, %s2478_s17 }
  0x33   :  { %p2485_p9 = por %p2484_p8, %p2483_p7 }
  0x35   :  { %p2486_p10 = pnand %p2485_p9, %p2479_p6 }
  0x37   :  { %2489 = shalt.err (!%p2486_p10)
}
  0x38   :  { %51 = dma.hbm_to_vmem [thread:$0]  %s2708_s2, 6144, %s46_s14, [#allocation5], %s2563_s23, %s2563_s23, %s2564_s24  }
  0x39   :  { %s2569_s19 = smov [#allocation9]   ;;  %s2570_s21 = smov [#allocation12]  }
  0x3a   :  { %s70_s20 = sshll.u32 %s2569_s19, 4  ;;  %s93_s0 = sshll.u32 %s2570_s21, 4  ;;  %s71_s20 = int_to_ptr.vmem [resolvable:$true] %s70_s20  ;;  %s94_s0 = int_to_ptr.vmem [resolvable:$true] %s93_s0 }
  0x3b   :  { %s2498_s22 = scalar_lea.vmem %s71_s20, 96  ;;  %p2503_p12 = scmp.lt.s32.totalorder %s71_s20, %s71_s20 }
  0x3c   :  { %p2499_p11 = scmp.ne.s32.totalorder %s71_s20, %s2498_s22  ;;  %p2504_p13 = scmp.lt.s32.totalorder %s2498_s22, %s2498_s22 }
  0x3e   :  { %p2505_p0 = por %p2504_p13, %p2503_p12 }
  0x40   :  { %p2506_p1 = pnand %p2505_p0, %p2499_p11 }
  0x42   :  { %2509 = shalt.err (!%p2506_p1)
}
  0x43   :  { %73 = dma.hbm_to_vmem [thread:$0]  %s2710_s4, 96, %s71_s20, [#allocation8]  }
  0x44   :  { %s2518_s1 = scalar_lea.vmem %s94_s0, 2048  ;;  %p2523_p3 = scmp.lt.s32.totalorder %s94_s0, %s94_s0 }
  0x45   :  { %p2519_p2 = scmp.ne.s32.totalorder %s94_s0, %s2518_s1  ;;  %p2524_p4 = scmp.lt.s32.totalorder %s2518_s1, %s2518_s1 }
  0x47   :  { %p2525_p5 = por %p2524_p4, %p2523_p3 }
  0x49   :  { %p2526_p6 = pnand %p2525_p5, %p2519_p2 }
  0x4b   :  { %2529 = shalt.err (!%p2526_p6)
}
  0x4c   :  { %s2571_s2 = smov 64   ;;  %s2572_s23 = smov 4  }
  0x4d   :  { %99 = dma.hbm_to_vmem [thread:$0]  %s2713_s7, 2048, %s94_s0, [#allocation11], %s2571_s2, %s2571_s2, %s2572_s23  }
  0x4e   :  { %s2573_s28 = smov [#allocation13]  }
  0x4f   :  { %s105_s29 = sshll.u32 %s2573_s28, 4  ;;  %s106_s29 = int_to_ptr.vmem [resolvable:$true] %s105_s29 }
  0x50   :  { %s2538_s30 = scalar_lea.vmem %s106_s29, 2048  ;;  %p2543_p8 = scmp.lt.s32.totalorder %s106_s29, %s106_s29 }
  0x51   :  { %p2539_p7 = scmp.ne.s32.totalorder %s106_s29, %s2538_s30  ;;  %p2544_p9 = scmp.lt.s32.totalorder %s2538_s30, %s2538_s30 }
  0x53   :  { %p2545_p10 = por %p2544_p9, %p2543_p8 }
  0x55   :  { %p2546_p11 = pnand %p2545_p10, %p2539_p7 }
  0x57   :  { %2549 = shalt.err (!%p2546_p11)
}
  0x58   :  { %111 = dma.hbm_to_vmem [thread:$0]  %s2714_s8, 2048, %s106_s29, [#allocation14], %s2571_s2, %s2571_s2, %s2572_s23  }
  0x59   :  { %2550 = dma.done.wait [#allocation3], 128  }
  0x5a   :  { %2551 = vsyncadd [#allocation3], 4294967168 }
  0x5b   :  { %2552 = dma.done.wait [#allocation5], 6272  }
  0x5c   :  { %2553 = vsyncadd [#allocation5], 4294961024 }
  0x5d   :  { %2554 = dma.done.wait [#allocation8], 6240  }
  0x5e   :  { %2555 = vsyncadd [#allocation8], 4294961056 }
  0x5f   :  { %2556 = dma.done.wait [#allocation11], 10240  }
  0x60   :  { %2557 = vsyncadd [#allocation11], 4294957056 }
  0x61   :  { %2558 = dma.done.wait [#allocation14], 2048  }
  0x62   :  { %2559 = vsyncadd [#allocation14], 4294965248  ;;  %v2574_v0 = vmov 0   ;;  %v2114_v1 = vld [vmem:[#allocation7 + $0x154] ss:$24 sps:$4 sm:$0xff]   ;;  %v141_v33 = vld [vmem:[#allocation4] sm:$0xff] }
  0x63   :  { %511 = vmatprep.mubr.bf16.mxu0 %v2574_v0  ;;  %552 = vmatprep.mubr.bf16.mxu1 %v2574_v0  ;;  %v2116_v2 = vld [vmem:[#allocation7 + $0x15c] ss:$24 sps:$4 sm:$0xff]   ;;  %v2118_v3 = vld [vmem:[#allocation7 + $0x150] ss:$24 sps:$4 sm:$0xff]   ;;  %v2122_v6 = vld [vmem:[#allocation7 + $0x12c] ss:$24 sps:$4 sm:$0xff]   ;;  %v2662_v36 = vpack.c.bf16 %v141_v33, %v141_v33 }
  0x64   :  { %479 = vmatprep.subr.bf16.mxu0 %v2114_v1  ;;  %v2119_v4 = vld [vmem:[#allocation7 + $0x158] ss:$24 sps:$4 sm:$0xff]   ;;  %520 = vmatprep.subr.bf16.mxu1 %v2116_v2  ;;  %v2120_v5 = vld [vmem:[#allocation7 + $0x124] ss:$24 sps:$4 sm:$0xff]   ;;  %v2125_v8 = vld [vmem:[#allocation7 + $0x128] ss:$24 sps:$4 sm:$0xff]  }
  0x65   :  { %480 = vmatpush1.bf16.msra.mxu0 %v2118_v3  ;;  %521 = vmatpush1.bf16.msra.mxu1 %v2119_v4  ;;  %v2124_v7 = vld [vmem:[#allocation7 + $0x120] ss:$24 sps:$4 sm:$0xff]   ;;  %v2126_v9 = vld [vmem:[#allocation7 + $0xf4] ss:$24 sps:$4 sm:$0xff]   ;;  %v2130_v11 = vld [vmem:[#allocation7 + $0xf0] ss:$24 sps:$4 sm:$0xff]  }
  0x66   :  { %481 = vmatprep.subr.bf16.mxu0 %v2120_v5  ;;  %522 = vmatprep.subr.bf16.mxu1 %v2122_v6  ;;  %v2128_v10 = vld [vmem:[#allocation7 + $0xfc] ss:$24 sps:$4 sm:$0xff]   ;;  %v2131_v12 = vld [vmem:[#allocation7 + $0xf8] ss:$24 sps:$4 sm:$0xff]   ;;  %v2134_v14 = vld [vmem:[#allocation7 + $0xcc] ss:$24 sps:$4 sm:$0xff]  }
  0x67   :  { %v2132_v13 = vld [vmem:[#allocation7 + $0xc4] ss:$24 sps:$4 sm:$0xff]   ;;  %v2136_v15 = vld [vmem:[#allocation7 + $0xc0] ss:$24 sps:$4 sm:$0xff]   ;;  %v2138_v17 = vld [vmem:[#allocation7 + $0x94] ss:$24 sps:$4 sm:$0xff]  }
  0x68   :  { %v2137_v16 = vld [vmem:[#allocation7 + $0xc8] ss:$24 sps:$4 sm:$0xff]   ;;  %v2140_v18 = vld [vmem:[#allocation7 + $0x9c] ss:$24 sps:$4 sm:$0xff]   ;;  %v2143_v20 = vld [vmem:[#allocation7 + $0x98] ss:$24 sps:$4 sm:$0xff]  }
  0x69   :  { %482 = vmatpush1.bf16.msra.mxu0 %v2124_v7  ;;  %523 = vmatpush1.bf16.msra.mxu1 %v2125_v8  ;;  %v2142_v19 = vld [vmem:[#allocation7 + $0x90] ss:$24 sps:$4 sm:$0xff]   ;;  %v2144_v21 = vld [vmem:[#allocation7 + $0x64] ss:$24 sps:$4 sm:$0xff]   ;;  %v2148_v23 = vld [vmem:[#allocation7 + $0x60] ss:$24 sps:$4 sm:$0xff]  }
  0x6a   :  { %483 = vmatprep.subr.bf16.mxu0 %v2126_v9  ;;  %524 = vmatprep.subr.bf16.mxu1 %v2128_v10  ;;  %v2146_v22 = vld [vmem:[#allocation7 + $0x6c] ss:$24 sps:$4 sm:$0xff]   ;;  %v2149_v24 = vld [vmem:[#allocation7 + $0x68] ss:$24 sps:$4 sm:$0xff]   ;;  %v2152_v26 = vld [vmem:[#allocation7 + $0x3c] ss:$24 sps:$4 sm:$0xff]  }
  0x6b   :  { %v2150_v25 = vld [vmem:[#allocation7 + $0x34] ss:$24 sps:$4 sm:$0xff]   ;;  %v2154_v27 = vld [vmem:[#allocation7 + $0x30] ss:$24 sps:$4 sm:$0xff]   ;;  %v2156_v29 = vld [vmem:[#allocation7 + $0x4] ss:$24 sps:$4 sm:$0xff]  }
  0x6c   :  { %v2155_v28 = vld [vmem:[#allocation7 + $0x38] ss:$24 sps:$4 sm:$0xff]   ;;  %v2158_v30 = vld [vmem:[#allocation7 + $0xc] ss:$24 sps:$4 sm:$0xff]   ;;  %v2161_v32 = vld [vmem:[#allocation7 + $0x8] ss:$24 sps:$4 sm:$0xff]  }
  0x6d   :  { %484 = vmatpush1.bf16.msra.mxu0 %v2130_v11  ;;  %525 = vmatpush1.bf16.msra.mxu1 %v2131_v12  ;;  %v2160_v31 = vld [vmem:[#allocation7] ss:$24 sps:$4 sm:$0xff]   ;;  %v2164_v34 = vld [vmem:[#allocation7 + $0x164] ss:$24 sps:$4 sm:$0xff]   ;;  %v2167_v35 = vld [vmem:[#allocation6 + $0x154] ss:$24 sps:$4 sm:$0xff]  }
  0x6e   :  { %485 = vmatprep.subr.bf16.mxu0 %v2132_v13  ;;  %526 = vmatprep.subr.bf16.mxu1 %v2134_v14  ;;  %v2162_v37 = vld [vmem:[#allocation7 + $0x160] ss:$24 sps:$4 sm:$0xff]   ;;  %v2165_v38 = vld [vmem:[#allocation6 + $0x150] ss:$24 sps:$4 sm:$0xff]   ;;  %v2170_v39 = vld [vmem:[#allocation7 + $0x134] ss:$24 sps:$4 sm:$0xff]  }
  0x6f   :  { %v2173_v40 = vld [vmem:[#allocation6 + $0x124] ss:$24 sps:$4 sm:$0xff]   ;;  %v2168_v41 = vld [vmem:[#allocation7 + $0x130] ss:$24 sps:$4 sm:$0xff]   ;;  %v2171_v42 = vld [vmem:[#allocation6 + $0x120] ss:$24 sps:$4 sm:$0xff]  }
  0x70   :  { %v2176_v43 = vld [vmem:[#allocation7 + $0x104] ss:$24 sps:$4 sm:$0xff]   ;;  %v2179_v44 = vld [vmem:[#allocation6 + $0xf4] ss:$24 sps:$4 sm:$0xff]   ;;  %v2174_v45 = vld [vmem:[#allocation7 + $0x100] ss:$24 sps:$4 sm:$0xff]  }
  0x71   :  { %486 = vmatpush1.bf16.msra.mxu0 %v2136_v15  ;;  %527 = vmatpush1.bf16.msra.mxu1 %v2137_v16  ;;  %v2177_v46 = vld [vmem:[#allocation6 + $0xf0] ss:$24 sps:$4 sm:$0xff]   ;;  %v2182_v47 = vld [vmem:[#allocation7 + $0xd4] ss:$24 sps:$4 sm:$0xff]   ;;  %v2185_v48 = vld [vmem:[#allocation6 + $0xc4] ss:$24 sps:$4 sm:$0xff]  }
  0x72   :  { %487 = vmatprep.subr.bf16.mxu0 %v2138_v17  ;;  %528 = vmatprep.subr.bf16.mxu1 %v2140_v18  ;;  %v2180_v49 = vld [vmem:[#allocation7 + $0xd0] ss:$24 sps:$4 sm:$0xff]   ;;  %v2183_v50 = vld [vmem:[#allocation6 + $0xc0] ss:$24 sps:$4 sm:$0xff]   ;;  %v2188_v51 = vld [vmem:[#allocation7 + $0xa4] ss:$24 sps:$4 sm:$0xff]  }
  0x73   :  { %v2191_v52 = vld [vmem:[#allocation6 + $0x94] ss:$24 sps:$4 sm:$0xff]   ;;  %v2186_v53 = vld [vmem:[#allocation7 + $0xa0] ss:$24 sps:$4 sm:$0xff]   ;;  %v2189_v54 = vld [vmem:[#allocation6 + $0x90] ss:$24 sps:$4 sm:$0xff]  }
  0x74   :  { %v2194_v55 = vld [vmem:[#allocation7 + $0x74] ss:$24 sps:$4 sm:$0xff]   ;;  %v2197_v56 = vld [vmem:[#allocation6 + $0x64] ss:$24 sps:$4 sm:$0xff]   ;;  %v2192_v57 = vld [vmem:[#allocation7 + $0x70] ss:$24 sps:$4 sm:$0xff]  }
  0x75   :  { %488 = vmatpush1.bf16.msra.mxu0 %v2142_v19  ;;  %529 = vmatpush1.bf16.msra.mxu1 %v2143_v20  ;;  %v2195_v58 = vld [vmem:[#allocation6 + $0x60] ss:$24 sps:$4 sm:$0xff]   ;;  %v2200_v59 = vld [vmem:[#allocation7 + $0x44] ss:$24 sps:$4 sm:$0xff]   ;;  %v2203_v60 = vld [vmem:[#allocation6 + $0x34] ss:$24 sps:$4 sm:$0xff]  }
  0x76   :  { %489 = vmatprep.subr.bf16.mxu0 %v2144_v21  ;;  %530 = vmatprep.subr.bf16.mxu1 %v2146_v22  ;;  %v2198_v61 = vld [vmem:[#allocation7 + $0x40] ss:$24 sps:$4 sm:$0xff]   ;;  %v2201_v62 = vld [vmem:[#allocation6 + $0x30] ss:$24 sps:$4 sm:$0xff]   ;;  %v2206_v63 = vld [vmem:[#allocation7 + $0x14] ss:$24 sps:$4 sm:$0xff]  }
  0x77   :  { %v2209_v1 = vld [vmem:[#allocation6 + $0x4] ss:$24 sps:$4 sm:$0xff]   ;;  %v2204_v2 = vld [vmem:[#allocation7 + $0x10] ss:$24 sps:$4 sm:$0xff]   ;;  %v2207_v3 = vld [vmem:[#allocation6] ss:$24 sps:$4 sm:$0xff]  }
  0x78   :  { %v139_v4 = vld [vmem:[#allocation2] sm:$0xff]  ;;  %v2215_v6 = vld [vmem:[#allocation6 + $0x164] ss:$24 sps:$4 sm:$0xff]   ;;  %v2213_v9 = vld [vmem:[#allocation6 + $0x160] ss:$24 sps:$4 sm:$0xff]  }
  0x79   :  { %490 = vmatpush1.bf16.msra.mxu0 %v2148_v23  ;;  %531 = vmatpush1.bf16.msra.mxu1 %v2149_v24  ;;  %v2212_v5 = vld [vmem:[#allocation6 + $0x15c] ss:$24 sps:$4 sm:$0xff]   ;;  %v2668_v7 = vpack.c.bf16 %v139_v4, %v139_v4  ;;  %v2210_v8 = vld [vmem:[#allocation6 + $0x158] ss:$24 sps:$4 sm:$0xff]   ;;  %v2218_v10 = vld [vmem:[#allocation6 + $0x12c] ss:$24 sps:$4 sm:$0xff]  }
  0x7a   :  { %491 = vmatprep.subr.bf16.mxu0 %v2150_v25  ;;  %532 = vmatprep.subr.bf16.mxu1 %v2152_v26  ;;  %v2221_v11 = vld [vmem:[#allocation6 + $0x134] ss:$24 sps:$4 sm:$0xff]   ;;  %v2216_v12 = vld [vmem:[#allocation6 + $0x128] ss:$24 sps:$4 sm:$0xff]   ;;  %v2227_v15 = vld [vmem:[#allocation6 + $0x104] ss:$24 sps:$4 sm:$0xff]  }
  0x7b   :  { %v2219_v13 = vld [vmem:[#allocation6 + $0x130] ss:$24 sps:$4 sm:$0xff]   ;;  %v2224_v14 = vld [vmem:[#allocation6 + $0xfc] ss:$24 sps:$4 sm:$0xff]   ;;  %v2225_v17 = vld [vmem:[#allocation6 + $0x100] ss:$24 sps:$4 sm:$0xff]  }
  0x7c   :  { %v2222_v16 = vld [vmem:[#allocation6 + $0xf8] ss:$24 sps:$4 sm:$0xff]   ;;  %v2230_v18 = vld [vmem:[#allocation6 + $0xcc] ss:$24 sps:$4 sm:$0xff]   ;;  %v2228_v20 = vld [vmem:[#allocation6 + $0xc8] ss:$24 sps:$4 sm:$0xff]  }
  0x7d   :  { %492 = vmatpush1.bf16.msra.mxu0 %v2154_v27  ;;  %533 = vmatpush1.bf16.msra.mxu1 %v2155_v28  ;;  %v2233_v19 = vld [vmem:[#allocation6 + $0xd4] ss:$24 sps:$4 sm:$0xff]   ;;  %v2231_v21 = vld [vmem:[#allocation6 + $0xd0] ss:$24 sps:$4 sm:$0xff]   ;;  %v2239_v23 = vld [vmem:[#allocation6 + $0xa4] ss:$24 sps:$4 sm:$0xff]  }
  0x7e   :  { %493 = vmatprep.subr.bf16.mxu0 %v2156_v29  ;;  %534 = vmatprep.subr.bf16.mxu1 %v2158_v30  ;;  %v2236_v22 = vld [vmem:[#allocation6 + $0x9c] ss:$24 sps:$4 sm:$0xff]   ;;  %v2234_v24 = vld [vmem:[#allocation6 + $0x98] ss:$24 sps:$4 sm:$0xff]   ;;  %v2242_v26 = vld [vmem:[#allocation6 + $0x6c] ss:$24 sps:$4 sm:$0xff]  }
  0x7f   :  { %v2237_v25 = vld [vmem:[#allocation6 + $0xa0] ss:$24 sps:$4 sm:$0xff]   ;;  %v2245_v27 = vld [vmem:[#allocation6 + $0x74] ss:$24 sps:$4 sm:$0xff]   ;;  %v2243_v28 = vld [vmem:[#allocation6 + $0x70] ss:$24 sps:$4 sm:$0xff]  }
  0x80   :  { %v2248_v29 = vld [vmem:[#allocation6 + $0x3c] ss:$24 sps:$4 sm:$0xff]   ;;  %v2254_v33 = vld [vmem:[#allocation6 + $0xc] ss:$24 sps:$4 sm:$0xff]  }
  0x81   :  { %494 = vmatpush1.bf16.msra.mxu0 %v2160_v31  ;;  %535 = vmatpush1.bf16.msra.mxu1 %v2161_v32  ;;  %v2251_v30 = vld [vmem:[#allocation6 + $0x44] ss:$24 sps:$4 sm:$0xff]   ;;  %v2246_v31 = vld [vmem:[#allocation6 + $0x38] ss:$24 sps:$4 sm:$0xff]  }
  0x82   :  { %561 = vmatprep.subr.bf16.mxu0 %v2164_v34  ;;  %842 = vmatprep.subr.bf16.mxu1 %v2167_v35  ;;  %v2249_v32 = vld [vmem:[#allocation6 + $0x40] ss:$24 sps:$4 sm:$0xff]   ;;  %v2257_v34 = vld [vmem:[#allocation6 + $0x14] ss:$24 sps:$4 sm:$0xff]  }
  0x83   :  { %v2252_v35 = vld [vmem:[#allocation6 + $0x8] ss:$24 sps:$4 sm:$0xff]  }
  0x84   :  { %512 = vmatmul.mubr.bf16.vlgmr.msra.gmra.mxu0 %v2662_v36  ;;  %553 = vmatmul.mubr.bf16.vlgmr.msra.gmra.mxu1 %v2662_v36  ;;  %v2315_v4 = vld [vmem:[#allocation10 + $0x120] ss:$8 sps:$4 sm:$0xff]  }
  0x85   :  { %562 = vmatpush1.bf16.msra.mxu0 %v2162_v37  ;;  %843 = vmatpush1.bf16.msra.mxu1 %v2165_v38  ;;  %v2260_v37 = vld [vmem:[#allocation10 + $0x74] ss:$8 sps:$4 sm:$0xff]   ;;  %v2258_v38 = vld [vmem:[#allocation10 + $0x70] ss:$8 sps:$4 sm:$0xff]  }
  0x86   :  { %563 = vmatprep.subr.bf16.mxu0 %v2170_v39  ;;  %844 = vmatprep.subr.bf16.mxu1 %v2173_v40  ;;  %v2263_v39 = vld [vmem:[#allocation10 + $0x64] ss:$8 sps:$4 sm:$0xff]   ;;  %v2261_v40 = vld [vmem:[#allocation10 + $0x60] ss:$8 sps:$4 sm:$0xff]  }
  0x87   :  { %593 = vmatprep.mubr.bf16.mxu0 %v2574_v0  ;;  %874 = vmatprep.mubr.bf16.mxu1 %v2574_v0 }
  0x89   :  { %564 = vmatpush1.bf16.msra.mxu0 %v2168_v41  ;;  %845 = vmatpush1.bf16.msra.mxu1 %v2171_v42  ;;  %v2266_v41 = vld [vmem:[#allocation10 + $0x54] ss:$8 sps:$4 sm:$0xff]   ;;  %v2264_v42 = vld [vmem:[#allocation10 + $0x50] ss:$8 sps:$4 sm:$0xff]  }
  0x8a   :  { %565 = vmatprep.subr.bf16.mxu0 %v2176_v43  ;;  %846 = vmatprep.subr.bf16.mxu1 %v2179_v44  ;;  %v2269_v43 = vld [vmem:[#allocation10 + $0x44] ss:$8 sps:$4 sm:$0xff]   ;;  %v2285_v44 = vld [vmem:[#allocation10 + $0x170] ss:$8 sps:$4 sm:$0xff]  }
  0x8d   :  { %566 = vmatpush1.bf16.msra.mxu0 %v2174_v45  ;;  %847 = vmatpush1.bf16.msra.mxu1 %v2177_v46  ;;  %v2287_v45 = vld [vmem:[#allocation10 + $0x174] ss:$8 sps:$4 sm:$0xff]   ;;  %v2267_v46 = vld [vmem:[#allocation10 + $0x40] ss:$8 sps:$4 sm:$0xff]  }
  0x8e   :  { %567 = vmatprep.subr.bf16.mxu0 %v2182_v47  ;;  %848 = vmatprep.subr.bf16.mxu1 %v2185_v48  ;;  %v2293_v47 = vld [vmem:[#allocation10 + $0x164] ss:$8 sps:$4 sm:$0xff]   ;;  %v2272_v48 = vld [vmem:[#allocation10 + $0x34] ss:$8 sps:$4 sm:$0xff]  }
  0x91   :  { %568 = vmatpush1.bf16.msra.mxu0 %v2180_v49  ;;  %849 = vmatpush1.bf16.msra.mxu1 %v2183_v50  ;;  %v2291_v49 = vld [vmem:[#allocation10 + $0x160] ss:$8 sps:$4 sm:$0xff]   ;;  %v2299_v50 = vld [vmem:[#allocation10 + $0x154] ss:$8 sps:$4 sm:$0xff]  }
  0x92   :  { %569 = vmatprep.subr.bf16.mxu0 %v2188_v51  ;;  %850 = vmatprep.subr.bf16.mxu1 %v2191_v52  ;;  %v2270_v51 = vld [vmem:[#allocation10 + $0x30] ss:$8 sps:$4 sm:$0xff]   ;;  %v2275_v52 = vld [vmem:[#allocation10 + $0x24] ss:$8 sps:$4 sm:$0xff]  }
  0x95   :  { %570 = vmatpush1.bf16.msra.mxu0 %v2186_v53  ;;  %851 = vmatpush1.bf16.msra.mxu1 %v2189_v54  ;;  %v2297_v53 = vld [vmem:[#allocation10 + $0x150] ss:$8 sps:$4 sm:$0xff]   ;;  %v2305_v54 = vld [vmem:[#allocation10 + $0x144] ss:$8 sps:$4 sm:$0xff]  }
  0x96   :  { %571 = vmatprep.subr.bf16.mxu0 %v2194_v55  ;;  %852 = vmatprep.subr.bf16.mxu1 %v2197_v56  ;;  %v2273_v55 = vld [vmem:[#allocation10 + $0x20] ss:$8 sps:$4 sm:$0xff]   ;;  %v2278_v56 = vld [vmem:[#allocation10 + $0x14] ss:$8 sps:$4 sm:$0xff]  }
  0x99   :  { %572 = vmatpush1.bf16.msra.mxu0 %v2192_v57  ;;  %853 = vmatpush1.bf16.msra.mxu1 %v2195_v58  ;;  %v2303_v57 = vld [vmem:[#allocation10 + $0x140] ss:$8 sps:$4 sm:$0xff]   ;;  %v2311_v58 = vld [vmem:[#allocation10 + $0x134] ss:$8 sps:$4 sm:$0xff]  }
  0x9a   :  { %573 = vmatprep.subr.bf16.mxu0 %v2200_v59  ;;  %854 = vmatprep.subr.bf16.mxu1 %v2203_v60  ;;  %v2276_v59 = vld [vmem:[#allocation10 + $0x10] ss:$8 sps:$4 sm:$0xff]   ;;  %v2281_v60 = vld [vmem:[#allocation10 + $0x4] ss:$8 sps:$4 sm:$0xff]  }
  0x9d   :  { %574 = vmatpush1.bf16.msra.mxu0 %v2198_v61  ;;  %855 = vmatpush1.bf16.msra.mxu1 %v2201_v62  ;;  %v2309_v61 = vld [vmem:[#allocation10 + $0x130] ss:$8 sps:$4 sm:$0xff]   ;;  %v2279_v62 = vld [vmem:[#allocation10] ss:$8 sps:$4 sm:$0xff]  }
  0x9e   :  { %575 = vmatprep.subr.bf16.mxu0 %v2206_v63  ;;  %856 = vmatprep.subr.bf16.mxu1 %v2209_v1  ;;  %v2284_v63 = vld [vmem:[#allocation10 + $0xf4] ss:$8 sps:$4 sm:$0xff]   ;;  %v2282_v1 = vld [vmem:[#allocation10 + $0xf0] ss:$8 sps:$4 sm:$0xff]  }
  0xa1   :  { %576 = vmatpush1.bf16.msra.mxu0 %v2204_v2  ;;  %857 = vmatpush1.bf16.msra.mxu1 %v2207_v3  ;;  %v2290_v2 = vld [vmem:[#allocation10 + $0xe4] ss:$8 sps:$4 sm:$0xff]  }
  0xa2   :  { %883 = vmatprep.subr.bf16.mxu0 %v2212_v5  ;;  %924 = vmatprep.subr.bf16.mxu1 %v2215_v6  ;;  %v2317_v3 = vld [vmem:[#allocation10 + $0x124] ss:$8 sps:$4 sm:$0xff]   ;;  %v2288_v5 = vld [vmem:[#allocation10 + $0xe0] ss:$8 sps:$4 sm:$0xff]   ;;  %v2296_v6 = vld [vmem:[#allocation10 + $0xd4] ss:$8 sps:$4 sm:$0xff]  }
  0xa4   :  { %594 = vmatmul.mubr.bf16.vlgmr.msra.gmra.mxu0 %v2662_v36  ;;  %875 = vmatmul.mubr.bf16.vlgmr.msra.gmra.mxu1 %v2668_v7  ;;  %v2255_v36 = vld [vmem:[#allocation6 + $0x10] ss:$24 sps:$4 sm:$0xff]  }
  0xa5   :  { %884 = vmatpush1.bf16.msra.mxu0 %v2210_v8  ;;  %925 = vmatpush1.bf16.msra.mxu1 %v2213_v9  ;;  %v2321_v8 = vld [vmem:[#allocation10 + $0x110] ss:$8 sps:$4 sm:$0xff]  }
  0xa6   :  { %885 = vmatprep.subr.bf16.mxu0 %v2218_v10  ;;  %926 = vmatprep.subr.bf16.mxu1 %v2221_v11  ;;  %v2294_v9 = vld [vmem:[#allocation10 + $0xd0] ss:$8 sps:$4 sm:$0xff]   ;;  %v2302_v10 = vld [vmem:[#allocation10 + $0xc4] ss:$8 sps:$4 sm:$0xff]  }
  0xa7   :  { %915 = vmatprep.mubr.bf16.mxu0 %v2574_v0  ;;  %956 = vmatprep.mubr.bf16.mxu1 %v2574_v0  ;;  %v2240_v0 = vld [vmem:[#allocation6 + $0x68] ss:$24 sps:$4 sm:$0xff]  }
  0xa8   :  { %v2329_v11 = vld [vmem:[#allocation10 + $0x104] ss:$8 sps:$4 sm:$0xff]  }
  0xa9   :  { %886 = vmatpush1.bf16.msra.mxu0 %v2216_v12  ;;  %927 = vmatpush1.bf16.msra.mxu1 %v2219_v13  ;;  %v2327_v12 = vld [vmem:[#allocation10 + $0x100] ss:$8 sps:$4 sm:$0xff]  }
  0xaa   :  { %887 = vmatprep.subr.bf16.mxu0 %v2224_v14  ;;  %928 = vmatprep.subr.bf16.mxu1 %v2227_v15  ;;  %v2300_v13 = vld [vmem:[#allocation10 + $0xc0] ss:$8 sps:$4 sm:$0xff]   ;;  %v2308_v14 = vld [vmem:[#allocation10 + $0xb4] ss:$8 sps:$4 sm:$0xff]  }
  0xab   :  { %v2332_v15 = vld [vmem:[#allocation10 + $0x1f4] ss:$8 sps:$4 sm:$0xff]  }
  0xad   :  { %888 = vmatpush1.bf16.msra.mxu0 %v2222_v16  ;;  %929 = vmatpush1.bf16.msra.mxu1 %v2225_v17  ;;  %v2330_v16 = vld [vmem:[#allocation10 + $0x1f0] ss:$8 sps:$4 sm:$0xff]  }
  0xae   :  { %889 = vmatprep.subr.bf16.mxu0 %v2230_v18  ;;  %930 = vmatprep.subr.bf16.mxu1 %v2233_v19  ;;  %v2306_v17 = vld [vmem:[#allocation10 + $0xb0] ss:$8 sps:$4 sm:$0xff]   ;;  %v2335_v18 = vld [vmem:[#allocation10 + $0x1e0] ss:$8 sps:$4 sm:$0xff]   ;;  %v2337_v19 = vld [vmem:[#allocation10 + $0x1e4] ss:$8 sps:$4 sm:$0xff]  }
  0xb1   :  { %890 = vmatpush1.bf16.msra.mxu0 %v2228_v20  ;;  %931 = vmatpush1.bf16.msra.mxu1 %v2231_v21  ;;  %v2314_v20 = vld [vmem:[#allocation10 + $0xa4] ss:$8 sps:$4 sm:$0xff]   ;;  %v2312_v21 = vld [vmem:[#allocation10 + $0xa0] ss:$8 sps:$4 sm:$0xff]  }
  0xb2   :  { %891 = vmatprep.subr.bf16.mxu0 %v2236_v22  ;;  %932 = vmatprep.subr.bf16.mxu1 %v2239_v23  ;;  %v2340_v22 = vld [vmem:[#allocation10 + $0x1d0] ss:$8 sps:$4 sm:$0xff]   ;;  %v2342_v23 = vld [vmem:[#allocation10 + $0x1d4] ss:$8 sps:$4 sm:$0xff]  }
  0xb5   :  { %892 = vmatpush1.bf16.msra.mxu0 %v2234_v24  ;;  %933 = vmatpush1.bf16.msra.mxu1 %v2237_v25  ;;  %v2320_v24 = vld [vmem:[#allocation10 + $0x94] ss:$8 sps:$4 sm:$0xff]   ;;  %v2318_v25 = vld [vmem:[#allocation10 + $0x90] ss:$8 sps:$4 sm:$0xff]  }
  0xb6   :  { %893 = vmatprep.subr.bf16.mxu0 %v2242_v26  ;;  %934 = vmatprep.subr.bf16.mxu1 %v2245_v27  ;;  %v2345_v26 = vld [vmem:[#allocation10 + $0x1c0] ss:$8 sps:$4 sm:$0xff]   ;;  %v2347_v27 = vld [vmem:[#allocation10 + $0x1c4] ss:$8 sps:$4 sm:$0xff]  }
  0xb9   :  { %894 = vmatpush1.bf16.msra.mxu0 %v2240_v0  ;;  %935 = vmatpush1.bf16.msra.mxu1 %v2243_v28  ;;  %v2326_v0 = vld [vmem:[#allocation10 + $0x84] ss:$8 sps:$4 sm:$0xff]   ;;  %v2324_v28 = vld [vmem:[#allocation10 + $0x80] ss:$8 sps:$4 sm:$0xff]  }
  0xba   :  { %895 = vmatprep.subr.bf16.mxu0 %v2248_v29  ;;  %936 = vmatprep.subr.bf16.mxu1 %v2251_v30  ;;  %v2350_v29 = vld [vmem:[#allocation10 + $0x1b0] ss:$8 sps:$4 sm:$0xff]   ;;  %v2352_v30 = vld [vmem:[#allocation10 + $0x1b4] ss:$8 sps:$4 sm:$0xff]  }
  0xbd   :  { %896 = vmatpush1.bf16.msra.mxu0 %v2246_v31  ;;  %937 = vmatpush1.bf16.msra.mxu1 %v2249_v32  ;;  %v2333_v31 = vld [vmem:[#allocation13 + $0x78] sm:$0xff]   ;;  %v2357_v32 = vld [vmem:[#allocation10 + $0x1a4] ss:$8 sps:$4 sm:$0xff]  }
  0xbe   :  { %897 = vmatprep.subr.bf16.mxu0 %v2254_v33  ;;  %938 = vmatprep.subr.bf16.mxu1 %v2257_v34  ;;  %v2355_v33 = vld [vmem:[#allocation10 + $0x1a0] ss:$8 sps:$4 sm:$0xff]   ;;  %v2362_v34 = vld [vmem:[#allocation10 + $0x194] ss:$8 sps:$4 sm:$0xff]  }
  0xc1   :  { %898 = vmatpush1.bf16.msra.mxu0 %v2252_v35  ;;  %939 = vmatpush1.bf16.msra.mxu1 %v2255_v36  ;;  %v2360_v35 = vld [vmem:[#allocation10 + $0x190] ss:$8 sps:$4 sm:$0xff]   ;;  %v2367_v36 = vld [vmem:[#allocation10 + $0x184] ss:$8 sps:$4 sm:$0xff]  }
  0xc2   :  { %1409 = vmatprep.subr.bf16.mxu0 %v2260_v37  ;;  %1450 = vmatprep.subr.bf16.mxu1 %v2287_v45  ;;  %v2365_v37 = vld [vmem:[#allocation10 + $0x180] ss:$8 sps:$4 sm:$0xff]  }
  0xc4   :  { %916 = vmatmul.mubr.bf16.vlgmr.msra.gmra.mxu0 %v2668_v7  ;;  %957 = vmatmul.mubr.bf16.vlgmr.msra.gmra.mxu1 %v2668_v7  ;;  %v2323_v7 = vld [vmem:[#allocation10 + $0x114] ss:$8 sps:$4 sm:$0xff]  }
  0xc5   :  { %1410 = vmatpush1.bf16.msra.mxu0 %v2258_v38  ;;  %1451 = vmatpush1.bf16.msra.mxu1 %v2285_v44 }
  0xc6   :  { %1411 = vmatprep.subr.bf16.mxu0 %v2263_v39  ;;  %1452 = vmatprep.subr.bf16.mxu1 %v2293_v47 }
  0xc9   :  { %1412 = vmatpush1.bf16.msra.mxu0 %v2261_v40  ;;  %1453 = vmatpush1.bf16.msra.mxu1 %v2291_v49  ;;  %v965_v49 = vld [vmem:[#allocation9] sm:$0x3f] }
  0xca   :  { %1413 = vmatprep.subr.bf16.mxu0 %v2266_v41  ;;  %1454 = vmatprep.subr.bf16.mxu1 %v2299_v50 }
  0xcd   :  { %1414 = vmatpush1.bf16.msra.mxu0 %v2264_v42  ;;  %1455 = vmatpush1.bf16.msra.mxu1 %v2297_v53 }
  0xce   :  { %1415 = vmatprep.subr.bf16.mxu0 %v2269_v43  ;;  %1456 = vmatprep.subr.bf16.mxu1 %v2305_v54 }
  0xd1   :  { %1416 = vmatpush1.bf16.msra.mxu0 %v2267_v46  ;;  %1457 = vmatpush1.bf16.msra.mxu1 %v2303_v57  ;;  %v967_v46 = vlaneseq }
  0xd2   :  { %1417 = vmatprep.subr.bf16.mxu0 %v2272_v48  ;;  %1458 = vmatprep.subr.bf16.mxu1 %v2311_v58 }
  0xd3   :  { %v2679_v47 = vshrl.u32 %v967_v46, 7 }
  0xd5   :  { %1418 = vmatpush1.bf16.msra.mxu0 %v2270_v51  ;;  %1459 = vmatpush1.bf16.msra.mxu1 %v2309_v61  ;;  %v969_v48 = vsub.s32 0, %v2679_v47  ;;  %v973_v50 = vsub.s32 1, %v2679_v47 }
  0xd6   :  { %1419 = vmatprep.subr.bf16.mxu0 %v2275_v52  ;;  %1460 = vmatprep.subr.bf16.mxu1 %v2317_v3 }
  0xd7   :  { %v970_v51 = vrot.slane %v965_v49, %v969_v48 }
  0xd9   :  { %1420 = vmatpush1.bf16.msra.mxu0 %v2273_v55  ;;  %1461 = vmatpush1.bf16.msra.mxu1 %v2315_v4  ;;  %v974_v55 = vrot.slane %v965_v49, %v973_v50 }
  0xda   :  { %1421 = vmatprep.subr.bf16.mxu0 %v2278_v56  ;;  %1462 = vmatprep.subr.bf16.mxu1 %v2323_v7  ;;  %v2338_v7 = vld [vmem:[#allocation13 + $0x70] sm:$0xff]  }
  0xdd   :  { %1422 = vmatpush1.bf16.msra.mxu0 %v2276_v59  ;;  %1463 = vmatpush1.bf16.msra.mxu1 %v2321_v8  ;;  %v2339_v8 = vld [vmem:[#allocation13 + $0x30] sm:$0xff]  }
  0xde   :  { %1423 = vmatprep.subr.bf16.mxu0 %v2281_v60  ;;  %1464 = vmatprep.subr.bf16.mxu1 %v2329_v11  ;;  %v2348_v11 = vld [vmem:[#allocation13 + $0x60] sm:$0xff]  }
  0xe1   :  { %1424 = vmatpush1.bf16.msra.mxu0 %v2279_v62  ;;  %1465 = vmatpush1.bf16.msra.mxu1 %v2327_v12  ;;  %v2349_v12 = vld [vmem:[#allocation13 + $0x20] sm:$0xff]  }
  0xe2   :  { %1425 = vmatprep.subr.bf16.mxu0 %v2284_v63  ;;  %1466 = vmatprep.subr.bf16.mxu1 %v2332_v15  ;;  %v2358_v15 = vld [vmem:[#allocation13 + $0x50] sm:$0xff]  }
  0xe5   :  { %1426 = vmatpush2.bf16.msra.mxu0 %v2282_v1  ;;  %1467 = vmatpush2.bf16.msra.mxu1 %v2330_v16  ;;  %v977_v16 = vsub.s32 2, %v2679_v47 }
  0xe6   :  { %1427 = vmatprep.subr.bf16.mxu0 %v2290_v2  ;;  %1468 = vmatprep.subr.bf16.mxu1 %v2337_v19  ;;  %v981_v19 = vsub.s32 3, %v2679_v47 }
  0xe9   :  { %1428 = vmatpush2.bf16.msra.mxu0 %v2288_v5  ;;  %1469 = vmatpush2.bf16.msra.mxu1 %v2335_v18  ;;  %v2334_v5 = vld [vmem:[#allocation13 + $0x38] sm:$0xff]   ;;  %v2359_v18 = vld [vmem:[#allocation13 + $0x10] sm:$0xff]  }
  0xea   :  { %1429 = vmatprep.subr.bf16.mxu0 %v2296_v6  ;;  %1470 = vmatprep.subr.bf16.mxu1 %v2342_v23 }
  0xed   :  { %1430 = vmatpush2.bf16.msra.mxu0 %v2294_v9  ;;  %1471 = vmatpush2.bf16.msra.mxu1 %v2340_v22  ;;  %v2343_v9 = vld [vmem:[#allocation13 + $0x68] sm:$0xff]   ;;  %v978_v22 = vrot.slane %v965_v49, %v977_v16 }
  0xee   :  { %1431 = vmatprep.subr.bf16.mxu0 %v2302_v10  ;;  %1472 = vmatprep.subr.bf16.mxu1 %v2347_v27  ;;  %v2344_v10 = vld [vmem:[#allocation13 + $0x28] sm:$0xff]  }
  0xf1   :  { %1432 = vmatpush2.bf16.msra.mxu0 %v2300_v13  ;;  %1473 = vmatpush2.bf16.msra.mxu1 %v2345_v26  ;;  %v2353_v13 = vld [vmem:[#allocation13 + $0x58] sm:$0xff]  }
  0xf2   :  { %1433 = vmatprep.subr.bf16.mxu0 %v2308_v14  ;;  %1474 = vmatprep.subr.bf16.mxu1 %v2352_v30  ;;  %v2354_v14 = vld [vmem:[#allocation13 + $0x18] sm:$0xff]  }
  0xf5   :  { %1434 = vmatpush2.bf16.msra.mxu0 %v2306_v17  ;;  %1475 = vmatpush2.bf16.msra.mxu1 %v2350_v29  ;;  %v985_v17 = vsub.s32 4, %v2679_v47  ;;  %v2364_v29 = vld [vmem:[#allocation13 + $0x8] sm:$0xff]  }
  0xf6   :  { %1435 = vmatprep.subr.bf16.mxu0 %v2314_v20  ;;  %1476 = vmatprep.subr.bf16.mxu1 %v2357_v32  ;;  %v989_v20 = vsub.s32 5, %v2679_v47  ;;  %v2368_v32 = vld [vmem:[#allocation13 + $0x40] sm:$0xff]  }
  0xf7   :  { %v986_v23 = vrot.slane %v965_v49, %v985_v17 }
  0xf9   :  { %1436 = vmatpush2.bf16.msra.mxu0 %v2312_v21  ;;  %1477 = vmatpush2.bf16.msra.mxu1 %v2355_v33  ;;  %v2363_v21 = vld [vmem:[#allocation13 + $0x48] sm:$0xff]  }
  0xfa   :  { %1437 = vmatprep.subr.bf16.mxu0 %v2320_v24  ;;  %1478 = vmatprep.subr.bf16.mxu1 %v2362_v34 }
  0xfd   :  { %1438 = vmatpush2.bf16.msra.mxu0 %v2318_v25  ;;  %1479 = vmatpush2.bf16.msra.mxu1 %v2360_v35 }
  0xfe   :  { %1439 = vmatprep.subr.bf16.mxu0 %v2326_v0  ;;  %1480 = vmatprep.subr.bf16.mxu1 %v2367_v36  ;;  %v982_v0 = vrot.slane %v965_v49, %v981_v19 }
 0x101   :  { %1440 = vmatpush2.bf16.msra.mxu0 %v2324_v28  ;;  %1481 = vmatpush2.bf16.msra.mxu1 %v2365_v37  ;;  %v990_v28 = vrot.slane %v965_v49, %v989_v20 }
 0x102   :  { %2055 = vmatprep.subr.bf16.mxu0 %v2333_v31 }
 0x144   :  { %v513_v38 = vpop.f32.mrf.mxu0  ;;  %v554_v39 = vpop.f32.mrf.mxu1 }
 0x146   :  { %v515_v40 = vpop.f32.mrf.mxu0  ;;  %v2676_v41 = vpop.f32.mrf.mxu1 }
 0x148   :  { %v517_v42 = vpop.f32.mrf.mxu0  ;;  %v558_v43 = vpop.f32.mrf.mxu1 }
 0x14a   :  { %v518_v44 = vpop.f32.mrf.mxu0  ;;  %v559_v45 = vpop.f32.mrf.mxu1 }
 0x164   :  { %v595_v52 = vpop.f32.mrf.mxu0  ;;  %v876_v53 = vpop.f32.mrf.mxu1 }
 0x165   :  { %v877_v54 = vadd.f32 %v876_v53, %v513_v38 }
 0x166   :  { %v597_v56 = vpop.f32.mrf.mxu0  ;;  %v878_v57 = vpop.f32.mrf.mxu1 }
 0x167   :  { %v997_v58 = vadd.f32 %v970_v51, %v877_v54  ;;  %v879_v59 = vadd.f32 %v878_v57, %v515_v40 }
 0x168   :  { %v599_v60 = vpop.f32.mrf.mxu0  ;;  %v880_v61 = vpop.f32.mrf.mxu1 }
 0x169   :  { %v998_v62 = vadd.f32 %v974_v55, %v879_v59  ;;  %v1003_v63 = vmax.f32 %v997_v58, 0.0  ;;  %v2372_v58 = vld [vmem:[#allocation12 + $0x70] sm:$0xff]   ;;  %v2374_v60 = vld [vmem:[#allocation12 + $0x68] sm:$0xff]  }
 0x16a   :  { %v600_v1 = vpop.f32.mrf.mxu0  ;;  %v881_v2 = vpop.f32.mrf.mxu1  ;;  %v2373_v59 = vld [vmem:[#allocation12 + $0x30] sm:$0xff]   ;;  %v2375_v61 = vld [vmem:[#allocation12 + $0x28] sm:$0xff]  }
 0x16b   :  { %v1004_v3 = vmax.f32 %v998_v62, 0.0  ;;  %v1009_v6 = vpack.c.bf16 %v1003_v63, %v1003_v63  ;;  %v2376_v62 = vld [vmem:[#allocation12 + $0x60] sm:$0xff]   ;;  %v2378_v1 = vld [vmem:[#allocation12 + $0x58] sm:$0xff]  }
 0x16c   :  { %v2377_v63 = vld [vmem:[#allocation12 + $0x20] sm:$0xff]   ;;  %v2379_v2 = vld [vmem:[#allocation12 + $0x18] sm:$0xff]  }
 0x16d   :  { %v1010_v4 = vpack.c.bf16 %v1004_v3, %v1004_v3  ;;  %v2380_v3 = vld [vmem:[#allocation12 + $0x50] sm:$0xff]  }
 0x16f   :  { %1441 = vmatprep.mubr.bf16.mxu0 %v1010_v4  ;;  %v2381_v4 = vld [vmem:[#allocation12 + $0x10] sm:$0xff]  }
 0x170   :  { %1442 = vmatmul.mubr.bf16.vlgmr.msra.gmra.mxu0 %v1009_v6  ;;  %v2383_v6 = vld [vmem:[#allocation12 + $0x8] sm:$0xff]  }
 0x171   :  { %2056 = vmatpush3.bf16.msra.mxu0 %v2334_v5  ;;  %v2382_v5 = vld [vmem:[#allocation12 + $0x48] sm:$0xff]  }
 0x172   :  { %2057 = vmatprep.subr.bf16.mxu0 %v2338_v7  ;;  %v2384_v7 = vld [vmem:[#allocation12 + $0x40] sm:$0xff]  }
 0x175   :  { %2058 = vmatpush3.bf16.msra.mxu0 %v2339_v8  ;;  %v2385_v8 = vld [vmem:[#allocation12] sm:$0xff]  }
 0x176   :  { %2059 = vmatprep.subr.bf16.mxu0 %v2343_v9 }
 0x179   :  { %2060 = vmatpush3.bf16.msra.mxu0 %v2344_v10 }
 0x17a   :  { %2061 = vmatprep.subr.bf16.mxu0 %v2348_v11 }
 0x17d   :  { %2062 = vmatpush3.bf16.msra.mxu0 %v2349_v12 }
 0x17e   :  { %2063 = vmatprep.subr.bf16.mxu0 %v2353_v13  ;;  %v1077_v13 = vld [vmem:[%s2712_s6] sm:$0x3] }
 0x181   :  { %2064 = vmatpush3.bf16.msra.mxu0 %v2354_v14  ;;  %v1082_v14 = vrot.slane %v1077_v13, %v969_v48 }
 0x182   :  { %2065 = vmatprep.subr.bf16.mxu0 %v2358_v15  ;;  %v1086_v15 = vrot.slane %v1077_v13, %v973_v50 }
 0x184   :  { %v917_v24 = vpop.f32.mrf.mxu0  ;;  %v958_v25 = vpop.f32.mrf.mxu1 }
 0x185   :  { %v918_v26 = vadd.f32 %v917_v24, %v554_v39  ;;  %v959_v27 = vadd.f32 %v958_v25, %v595_v52  ;;  %2066 = vmatpush3.bf16.msra.mxu0 %v2359_v18  ;;  %v2369_v39 = vld [vmem:[#allocation13] sm:$0xff]  }
 0x186   :  { %v919_v30 = vpop.f32.mrf.mxu0  ;;  %v960_v31 = vpop.f32.mrf.mxu1  ;;  %2067 = vmatprep.subr.bf16.mxu0 %v2363_v21 }
 0x187   :  { %v999_v33 = vadd.f32 %v978_v22, %v918_v26  ;;  %v1001_v34 = vadd.f32 %v986_v23, %v959_v27  ;;  %v920_v35 = vadd.f32 %v919_v30, %v2676_v41  ;;  %v961_v36 = vadd.f32 %v960_v31, %v597_v56  ;;  %v2370_v41 = vld [vmem:[#allocation12 + $0x78] sm:$0xff]  }
 0x188   :  { %v921_v37 = vpop.f32.mrf.mxu0  ;;  %v962_v38 = vpop.f32.mrf.mxu1  ;;  %v2371_v56 = vld [vmem:[#allocation12 + $0x38] sm:$0xff]   ;;  %2077 = vmatprep.subr.bf16.mxu1 %v2370_v41 }
 0x189   :  { %v1000_v40 = vadd.f32 %v982_v0, %v920_v35  ;;  %v1002_v42 = vadd.f32 %v990_v28, %v961_v36  ;;  %2068 = vmatpush3.bf16.msra.mxu0 %v2364_v29  ;;  %v1005_v43 = vmax.f32 %v999_v33, 0.0  ;;  %v1007_v44 = vmax.f32 %v1001_v34, 0.0 }
 0x18a   :  { %v922_v45 = vpop.f32.mrf.mxu0  ;;  %2069 = vmatprep.subr.bf16.mxu0 %v2368_v32  ;;  %v963_v49 = vpop.f32.mrf.mxu1  ;;  %v2053_v32 = vld [vmem:[%s2715_s9] ss:$0 sm:$0xff] }
 0x18b   :  { %v1006_v51 = vmax.f32 %v1000_v40, 0.0  ;;  %v1008_v52 = vmax.f32 %v1002_v42, 0.0  ;;  %v1011_v55 = vpack.c.bf16 %v1005_v43, %v1005_v43  ;;  %v1527_v57 = vpack.c.bf16 %v1007_v44, %v1007_v44 }
 0x18c   :  { %v1842_v42 = vand.u32 127, %v967_v46 }
 0x18d   :  { %v1012_v53 = vpack.c.bf16 %v1006_v51, %v1006_v51  ;;  %v1528_v54 = vpack.c.bf16 %v1008_v52, %v1008_v52  ;;  %2070 = vmatpush3.bf16.msra.mxu0 %v2369_v39 }
 0x18e   :  { %vm1843_vm0 = vcmp.eq.s32.totalorder %v1842_v42, 6 }
 0x18f   :  { %1482 = vmatprep.mubr.bf16.mxu1 %v1012_v53  ;;  %1689 = vmatprep.mubr.bf16.mxu0 %v1528_v54 }
 0x190   :  { %1483 = vmatmul.mubr.bf16.vlgmr.msra.gmra.mxu1 %v1011_v55  ;;  %1690 = vmatmul.mubr.bf16.vlgmr.msra.gmra.mxu0 %v1527_v57 }
 0x191   :  { %2078 = vmatpush3.bf16.msra.mxu1 %v2371_v56 }
 0x192   :  { %2079 = vmatprep.subr.bf16.mxu1 %v2372_v58 }
 0x195   :  { %2080 = vmatpush3.bf16.msra.mxu1 %v2373_v59 }
 0x196   :  { %2081 = vmatprep.subr.bf16.mxu1 %v2374_v60 }
 0x199   :  { %2082 = vmatpush3.bf16.msra.mxu1 %v2375_v61 }
 0x19a   :  { %2083 = vmatprep.subr.bf16.mxu1 %v2376_v62 }
 0x19d   :  { %2084 = vmatpush3.bf16.msra.mxu1 %v2377_v63 }
 0x19e   :  { %2085 = vmatprep.subr.bf16.mxu1 %v2378_v1 }
 0x1a1   :  { %2086 = vmatpush3.bf16.msra.mxu1 %v2379_v2 }
 0x1a2   :  { %2087 = vmatprep.subr.bf16.mxu1 %v2380_v3 }
 0x1a5   :  { %2088 = vmatpush3.bf16.msra.mxu1 %v2381_v4 }
 0x1a6   :  { %2089 = vmatprep.subr.bf16.mxu1 %v2382_v5 }
 0x1a9   :  { %2090 = vmatpush3.bf16.msra.mxu1 %v2383_v6 }
 0x1aa   :  { %2091 = vmatprep.subr.bf16.mxu1 %v2384_v7 }
 0x1ad   :  { %2092 = vmatpush3.bf16.msra.mxu1 %v2385_v8 }
 0x230   :  { %v1443_v9 = vpop.f32.mrf.mxu0 }
 0x231   :  { %v1444_v16 = vadd.f32 %v1443_v9, %v1082_v14 }
 0x232   :  { %v1445_v10 = vpop.f32.mrf.mxu0 }
 0x233   :  { %v1446_v19 = vadd.f32 %v1445_v10, %v1086_v15 }
 0x234   :  { %v1447_v11 = vpop.f32.mrf.mxu0 }
 0x236   :  { %v1448_v12 = vpop.f32.mrf.mxu0 }
 0x250   :  { %v1484_v17 = vpop.f32.mrf.mxu1  ;;  %v2071_v18 = vpop.f32.mrf.mxu0 }
 0x251   :  { %v1485_v20 = vadd.f32 %v1484_v17, %v1444_v16 }
 0x252   :  { %v1486_v21 = vpop.f32.mrf.mxu1  ;;  %v2072_v22 = vpop.f32.mrf.mxu0 }
 0x253   :  { %v1487_v23 = vadd.f32 %v1486_v21, %v1446_v19  ;;  %v2073_v24 = vadd.f32 %v2072_v22, %v2071_v18  ;;  %v1491_v25 = vmax.f32 %v1485_v20, 0.0 }
 0x254   :  { %v1488_v26 = vpop.f32.mrf.mxu1  ;;  %v2074_v27 = vpop.f32.mrf.mxu0 }
 0x255   :  { %v1492_v0 = vmax.f32 %v1487_v23, 0.0  ;;  %v1493_v48 = vpack.c.bf16 %v1491_v25, %v1491_v25 }
 0x256   :  { %v1489_v28 = vpop.f32.mrf.mxu1  ;;  %v2075_v29 = vpop.f32.mrf.mxu0 }
 0x257   :  { %v1494_v30 = vpack.c.bf16 %v1492_v0, %v1492_v0 }
 0x259   :  { %1825 = vmatprep.mubr.bf16.mxu1 %v1494_v30 }
 0x25a   :  { %1826 = vmatmul.mubr.bf16.vlgmr.msra.gmra.mxu1 %v1493_v48 }
 0x31a   :  { %v2093_v47 = vpop.f32.mrf.mxu1 }
 0x31c   :  { %v2094_v50 = vpop.f32.mrf.mxu1 }
 0x31d   :  { %v2095_v31 = vadd.f32 %v2094_v50, %v2093_v47 }
 0x31e   :  { %v2096_v33 = vpop.f32.mrf.mxu1 }
 0x31f   :  { %v1828_v34 = vadd.f32 %v2095_v31, %v2073_v24 }
 0x320   :  { %v2097_v35 = vpop.f32.mrf.mxu1 }
 0x321   :  { %v1840_v36 = vadd.f32 %v2053_v32, %v1828_v34 }
 0x323   :  { %v2054_v37 = vmul.f32 -1.442695, %v1840_v36 }
 0x325   :  { %2386 = vpow2.f32 %v2054_v37 }
 0x332   :  { %v2387_v38 = vpop.eup %2386 }
 0x333   :  { %v1847_v40 = vadd.f32 1.0, %v2387_v38 }
 0x335   :  { %2388 = vrcp.f32 %v1847_v40 }
 0x342   :  { %v2389_v39 = vpop.eup %2388 }
 0x343   :  { %v1850_v43 = vsel %vm1843_vm0, %v2389_v39, %v1840_v36 }
 0x344   :  { %1851 = vst [vmem:[%s2716_s10] sm:$0xff] %v1850_v43 }
 0x345   :  { %1856 = vsyncpa [#allocation3], 1 }
 0x346   :  { %1857 = vsyncpa [#allocation5], 1 }
 0x347   :  { %1858 = vsyncpa [#allocation8], 1 }
 0x348   :  { %1859 = vsyncpa [#allocation11], 1 }
 0x349   :  { %1860 = vsyncpa [#allocation14], 1 }

</bundles_post_ra>
